<compile_context>
chip_gen: v5e
topology: v5e:2x2
jax: 0.10.0
libtpu: 0.0.40
codegen_flags: <defaults>
</compile_context>

<pallas_src>
import functools

import jax
import jax.numpy as jnp
from jax.experimental import pallas as pl
from jax.experimental.pallas import tpu as pltpu


def _focal_factor(one_minus_p, gamma):
    """(1 - p) ** gamma; integer gamma is expanded into VPU multiplies."""
    g = float(gamma)
    if g == int(g) and 0 <= int(g) <= 8:
        e = int(g)
        if e == 0:
            return jnp.ones_like(one_minus_p)
        result = None
        base = one_minus_p
        while e:                         # exponentiation by squaring (static)
            if e & 1:
                result = base if result is None else result * base
            e >>= 1
            if e:
                base = base * base
        return result
    # Fractional gamma: base is already clamped >= 0 by the caller.
    return jnp.power(one_minus_p, jnp.float32(g))


def _focal_nll_kernel(logits_ref, labels_ref, sum_ref, cnt_ref, iota_ref, *,
                      gamma, ignore_lb):
    n = pl.program_id(1)
    t = pl.program_id(2)

    @pl.when(jnp.logical_and(n == 0, t == 0))
    def _():
        sum_ref[...] = jnp.zeros_like(sum_ref)
        cnt_ref[...] = jnp.zeros_like(cnt_ref)
        # Hoisted class-id iota: generated once (per core / per split),
        # re-read from VMEM on later steps instead of regenerated on the VPU.
        iota_ref[...] = jax.lax.broadcasted_iota(jnp.int32, iota_ref.shape, 0)

    x = logits_ref[0].astype(jnp.float32)          # (C, tile) classes on sublanes
    labels = labels_ref[0].astype(jnp.int32)       # (1, tile)

    # Numerically-stable softmax statistics along the class (sublane) axis.
    m = jnp.max(x, axis=0, keepdims=True)          # (1, tile)
    shifted = x - m
    denom = jnp.sum(jnp.exp(shifted), axis=0, keepdims=True)   # (1, tile)
    log_denom = jnp.log(denom)

    # Gather the label class's (shifted) logit via a one-hot sublane mask.
    onehot = iota_ref[...] == labels               # (C, tile)
    x_label = jnp.sum(jnp.where(onehot, shifted, 0.0), axis=0, keepdims=True)

    # Focal term only for the picked class (1, tile) — not the full (C, tile).
    logp_label = x_label - log_denom               # log_softmax at the label
    p_label = jnp.exp(logp_label)                  # softmax score at the label
    one_minus_p = jnp.maximum(1.0 - p_label, 0.0)  # clamp vs. fp rounding
    factor = _focal_factor(one_minus_p, gamma)

    # TRUE lane select (not arithmetic masking): tail / phantom tiles read
    # un-padded logits (possibly NaN/Inf garbage) but carry ignore_lb labels,
    # so they contribute exactly 0 here.
    valid = labels != ignore_lb
    sum_ref[0] += jnp.where(valid, -factor * logp_label, 0.0)
    cnt_ref[0] += jnp.where(valid, 1.0, 0.0)


def _default_num_splits():
    """2 grid splits only on two-TensorCore devices; 1 on v5e / v6e."""
    try:
        kind = jax.devices()[0].device_kind.lower()
    except Exception:
        return 1
    if "v7" in kind or "v5p" in kind:
        return 2
    if "v4" in kind and "lite" not in kind:
        return 2
    return 1


def softmax_focal_loss(logits, labels, *, gamma, ignore_lb=255,
                       tile_hw_max=32768, num_splits=None):
    """logits: (N, C, H, W) float (bf16 or f32, used in native dtype);
       labels: (N, H, W) int with values in [0, C) or == ignore_lb."""
    N, C, H, W = logits.shape
    HW = H * W

    # Free reshape only — no HBM transpose / pad / dtype cast of the logits.
    x = logits.reshape(N, C, HW)

    # Compact labels (uint8 when representable): 4x less label HBM traffic.
    lbl_dtype = jnp.uint8 if (C <= 255 and 0 <= ignore_lb <= 255) else jnp.int32
    y = labels.astype(lbl_dtype).reshape(N, 1, HW)

    if num_splits is None:
        num_splits = _default_num_splits()

    # Lane tile: multiple of 128, as large as practical (few grid steps).
    tile_hw_max = max(128, (int(tile_hw_max) // 128) * 128)
    tile_hw = min(tile_hw_max, ((HW + 127) // 128) * 128)

    n_tiles = (HW + tile_hw - 1) // tile_hw                 # real pixel tiles
    t_per_split = (n_tiles + num_splits - 1) // num_splits
    HW_pad = t_per_split * num_splits * tile_hw

    # Pad ONLY the labels (cheap) with ignore_lb; logits stay un-padded, so no
    # extra full-tensor HBM copy.  Tail / phantom tiles are neutralized by the
    # label-valid select in the kernel.
    if HW_pad != HW:
        y = jnp.pad(y, ((0, 0), (0, 0), (0, HW_pad - HW)),
                    constant_values=ignore_lb)

    t_last = n_tiles - 1   # clamp phantom logits tiles onto the last real one

    def logits_map(s, n, t):
        return (n, 0, jnp.minimum(s * t_per_split + t, t_last))

    def labels_map(s, n, t):
        return (n, 0, s * t_per_split + t)

    kernel = functools.partial(_focal_nll_kernel, gamma=float(gamma),
                               ignore_lb=int(ignore_lb))

    # Scoped VMEM: double-buffered inputs + resident accumulators + iota
    # scratch, plus headroom; capped well under v7x's 64 MiB physical VMEM.
    in_itemsize = jnp.dtype(x.dtype).itemsize
    lbl_itemsize = jnp.dtype(lbl_dtype).itemsize
    vmem_need = (2 * C * tile_hw * in_itemsize      # logits (double buffered)
                 + 2 * tile_hw * lbl_itemsize       # labels (double buffered)
                 + 2 * 2 * tile_hw * 4              # resident f32 accumulators
                 + C * tile_hw * 4)                 # iota scratch
    vmem_limit = int(min(max(vmem_need + (4 << 20), 16 << 20), 56 << 20))

    sum_out, cnt_out = pl.pallas_call(
        kernel,
        out_shape=(jax.ShapeDtypeStruct((num_splits, 1, tile_hw), jnp.float32),
                   jax.ShapeDtypeStruct((num_splits, 1, tile_hw), jnp.float32)),
        grid_spec=pltpu.PrefetchScalarGridSpec(
            num_scalar_prefetch=0,
            grid=(num_splits, N, t_per_split),
            in_specs=[
                pl.BlockSpec((1, C, tile_hw), logits_map),
                pl.BlockSpec((1, 1, tile_hw), labels_map),
            ],
            out_specs=[
                pl.BlockSpec((1, 1, tile_hw), lambda s, n, t: (s, 0, 0)),
                pl.BlockSpec((1, 1, tile_hw), lambda s, n, t: (s, 0, 0)),
            ],
            scratch_shapes=[pltpu.VMEM((C, tile_hw), jnp.int32)],
        ),
        compiler_params=pltpu.CompilerParams(
            dimension_semantics=("parallel", "arbitrary", "arbitrary"),
            vmem_limit_bytes=vmem_limit),
    )(x, y)

    # Tiny final cross-lane reduction + mean over non-ignored pixels.
    # NOTE: if every pixel is ignored this is 0/0 = NaN, matching PyTorch.
    return jnp.sum(sum_out) / jnp.sum(cnt_out)


def _reference(logits, labels, gamma, ignore_lb=255):
    # Pure-JAX reference mirroring the PyTorch module, for verification.
    logp = jax.nn.log_softmax(logits, axis=1)
    p = jax.nn.softmax(logits, axis=1)
    focal = jnp.power(1.0 - p, gamma) * logp                  # (N, C, H, W)
    labels_c = jnp.clip(labels, 0, logits.shape[1] - 1)
    picked = jnp.take_along_axis(focal, labels_c[:, None, :, :], axis=1)[:, 0]
    valid = (labels != ignore_lb).astype(jnp.float32)
    return jnp.sum(-picked * valid) / jnp.sum(valid)


if __name__ == "__main__":
    key = jax.random.PRNGKey(0)
    k1, k2 = jax.random.split(key)

    N, C, H, W = 2, 4, 16, 16
    gamma = 2.0
    ignore_lb = 255

    logits = jax.random.normal(k1, (N, C, H, W), dtype=jnp.float32)
    labels = jax.random.randint(k2, (N, H, W), 0, C, dtype=jnp.int32)
    # Sprinkle some ignored pixels.
    labels = labels.at[0, 0, :4].set(ignore_lb)
    labels = labels.at[1, 5, 7].set(ignore_lb)

    loss = softmax_focal_loss(logits, labels, gamma=gamma, ignore_lb=ignore_lb)
    loss = jax.block_until_ready(loss)

    ref = _reference(logits, labels, gamma, ignore_lb)
    assert jnp.allclose(loss, ref, rtol=1e-5, atol=1e-5), (loss, ref)

    print("KERNEL_OK")
</pallas_src>

<mosaic_0001>
module attributes {stable_mosaic.version = 11 : i64} {
  func.func @_focal_nll_kernel(%arg0: i32, %arg1: i32, %arg2: i32, %arg3: memref<1x4x256xf32, #tpu.memory_space<vmem>>, %arg4: memref<1x1x256xi8, #tpu.memory_space<vmem>>, %arg5: memref<1x1x256xf32, #tpu.memory_space<vmem>>, %arg6: memref<1x1x256xf32, #tpu.memory_space<vmem>>, %arg7: memref<4x256xi32, #tpu.memory_space<vmem>>) attributes {dimension_semantics = [#tpu.dimension_semantics<parallel>, #tpu.dimension_semantics<arbitrary>, #tpu.dimension_semantics<arbitrary>], iteration_bounds = array<i64: 1, 2, 1>, scalar_prefetch = 0 : i64, scratch_operands = 1 : i64, tpu.core_type = #tpu.core_type<tc>, window_params = [{transform_indices = @transform_0, window_bounds = array<i64: 1, 4, 256>}, {transform_indices = @transform_1, window_bounds = array<i64: 1, 1, 256>}, {transform_indices = @transform_2, window_bounds = array<i64: 1, 1, 256>}, {transform_indices = @transform_3, window_bounds = array<i64: 1, 1, 256>}]} {
    %c0_i32 = arith.constant 0 : i32
    %0 = arith.cmpi eq, %arg1, %c0_i32 : i32
    %c0_i32_0 = arith.constant 0 : i32
    %1 = arith.cmpi eq, %arg2, %c0_i32_0 : i32
    %2 = arith.andi %0, %1 : i1
    %3 = arith.extui %2 : i1 to i32
    %c0_i32_1 = arith.constant 0 : i32
    %4 = arith.cmpi ne, %3, %c0_i32_1 : i32
    scf.if %4 {
      %cst_30 = arith.constant 0.000000e+00 : f32
      %54 = vector.broadcast %cst_30 : f32 to vector<1x1x256xf32>
      %c0_31 = arith.constant 0 : index
      %c0_32 = arith.constant 0 : index
      %c0_33 = arith.constant 0 : index
      %55 = vector.load %arg5[%c0_31, %c0_32, %c0_33] : memref<1x1x256xf32, #tpu.memory_space<vmem>>, vector<1x1x256xf32>
      tpu.vector_store %arg5[%c0_31, %c0_32, %c0_33], %54 {strides = array<i32>} : memref<1x1x256xf32, #tpu.memory_space<vmem>>, vector<1x1x256xf32>,
      %cst_34 = arith.constant 0.000000e+00 : f32
      %56 = vector.broadcast %cst_34 : f32 to vector<1x1x256xf32>
      %c0_35 = arith.constant 0 : index
      %c0_36 = arith.constant 0 : index
      %c0_37 = arith.constant 0 : index
      %57 = vector.load %arg6[%c0_35, %c0_36, %c0_37] : memref<1x1x256xf32, #tpu.memory_space<vmem>>, vector<1x1x256xf32>
      tpu.vector_store %arg6[%c0_35, %c0_36, %c0_37], %56 {strides = array<i32>} : memref<1x1x256xf32, #tpu.memory_space<vmem>>, vector<1x1x256xf32>,
      %58 = tpu.iota {dimensions = array<i32: 0>} : vector<4x256xi32>
      %c0_38 = arith.constant 0 : index
      %c0_39 = arith.constant 0 : index
      %59 = vector.load %arg7[%c0_38, %c0_39] : memref<4x256xi32, #tpu.memory_space<vmem>>, vector<4x256xi32>
      tpu.vector_store %arg7[%c0_38, %c0_39], %58 {strides = array<i32>} : memref<4x256xi32, #tpu.memory_space<vmem>>, vector<4x256xi32>,
    } else {
    }
    %c0 = arith.constant 0 : index
    %c0_2 = arith.constant 0 : index
    %c0_3 = arith.constant 0 : index
    %5 = vector.load %arg3[%c0, %c0_2, %c0_3] : memref<1x4x256xf32, #tpu.memory_space<vmem>>, vector<1x4x256xf32>
    %6 = vector.shape_cast %5 : vector<1x4x256xf32> to vector<4x256xf32>
    %c0_4 = arith.constant 0 : index
    %c0_5 = arith.constant 0 : index
    %c0_6 = arith.constant 0 : index
    %7 = vector.load %arg4[%c0_4, %c0_5, %c0_6] : memref<1x1x256xi8, #tpu.memory_space<vmem>>, vector<1x1x256xi8>
    %8 = vector.shape_cast %7 : vector<1x1x256xi8> to vector<1x256xi8>
    %9 = arith.extui %8 : vector<1x256xi8> to vector<1x256xi32>
    %cst = arith.constant dense<0xFF800000> : vector<256xf32>
    %10 = vector.multi_reduction <maximumf>, %6, %cst [0] : vector<4x256xf32> to vector<256xf32>
    %11 = vector.shape_cast %10 : vector<256xf32> to vector<1x256xf32>
    %12 = vector.broadcast %11 : vector<1x256xf32> to vector<4x256xf32>
    %13 = arith.subf %6, %12 : vector<4x256xf32>
    %14 = math.exp %13 : vector<4x256xf32>
    %cst_7 = arith.constant dense<0.000000e+00> : vector<256xf32>
    %15 = vector.multi_reduction <add>, %14, %cst_7 [0] : vector<4x256xf32> to vector<256xf32>
    %16 = vector.shape_cast %15 : vector<256xf32> to vector<1x256xf32>
    %17 = math.log %16 : vector<1x256xf32>
    %c0_8 = arith.constant 0 : index
    %c0_9 = arith.constant 0 : index
    %18 = vector.load %arg7[%c0_8, %c0_9] : memref<4x256xi32, #tpu.memory_space<vmem>>, vector<4x256xi32>
    %19 = vector.broadcast %9 : vector<1x256xi32> to vector<4x256xi32>
    %20 = arith.cmpi eq, %18, %19 : vector<4x256xi32>
    %cst_10 = arith.constant 0.000000e+00 : f32
    %21 = vector.broadcast %cst_10 : f32 to vector<4x256xf32>
    %22 = arith.select %20, %13, %21 : vector<4x256xi1>, vector<4x256xf32>
    %cst_11 = arith.constant dense<0.000000e+00> : vector<256xf32>
    %23 = vector.multi_reduction <add>, %22, %cst_11 [0] : vector<4x256xf32> to vector<256xf32>
    %24 = vector.shape_cast %23 : vector<256xf32> to vector<1x256xf32>
    %25 = arith.subf %24, %17 : vector<1x256xf32>
    %26 = math.exp %25 : vector<1x256xf32>
    %cst_12 = arith.constant 1.000000e+00 : f32
    %27 = vector.broadcast %cst_12 : f32 to vector<1x256xf32>
    %28 = arith.subf %27, %26 : vector<1x256xf32>
    %cst_13 = arith.constant 0.000000e+00 : f32
    %29 = vector.broadcast %cst_13 : f32 to vector<1x256xf32>
    %30 = arith.maximumf %28, %29 : vector<1x256xf32>
    %31 = arith.mulf %30, %30 : vector<1x256xf32>
    %c255_i32 = arith.constant 255 : i32
    %32 = vector.broadcast %c255_i32 : i32 to vector<1x256xi32>
    %33 = arith.cmpi ne, %9, %32 : vector<1x256xi32>
    %c0_14 = arith.constant 0 : index
    %c0_15 = arith.constant 0 : index
    %c0_16 = arith.constant 0 : index
    %34 = vector.load %arg5[%c0_14, %c0_15, %c0_16] : memref<1x1x256xf32, #tpu.memory_space<vmem>>, vector<1x1x256xf32>
    %35 = vector.shape_cast %34 : vector<1x1x256xf32> to vector<1x256xf32>
    %cst_17 = arith.constant 0.000000e+00 : f32
    %36 = vector.broadcast %cst_17 : f32 to vector<1x256xf32>
    %37 = arith.subf %36, %31 : vector<1x256xf32>
    %38 = arith.mulf %37, %25 : vector<1x256xf32>
    %cst_18 = arith.constant 0.000000e+00 : f32
    %39 = vector.broadcast %cst_18 : f32 to vector<1x256xf32>
    %40 = arith.select %33, %38, %39 : vector<1x256xi1>, vector<1x256xf32>
    %41 = arith.addf %35, %40 : vector<1x256xf32>
    %c0_19 = arith.constant 0 : index
    %c0_20 = arith.constant 0 : index
    %c0_21 = arith.constant 0 : index
    %42 = vector.load %arg5[%c0_19, %c0_20, %c0_21] : memref<1x1x256xf32, #tpu.memory_space<vmem>>, vector<1x1x256xf32>
    %43 = vector.shape_cast %42 : vector<1x1x256xf32> to vector<1x256xf32>
    %44 = vector.shape_cast %41 : vector<1x256xf32> to vector<1x1x256xf32>
    tpu.vector_store %arg5[%c0_19, %c0_20, %c0_21], %44 {strides = array<i32>} : memref<1x1x256xf32, #tpu.memory_space<vmem>>, vector<1x1x256xf32>,
    %c0_22 = arith.constant 0 : index
    %c0_23 = arith.constant 0 : index
    %c0_24 = arith.constant 0 : index
    %45 = vector.load %arg6[%c0_22, %c0_23, %c0_24] : memref<1x1x256xf32, #tpu.memory_space<vmem>>, vector<1x1x256xf32>
    %46 = vector.shape_cast %45 : vector<1x1x256xf32> to vector<1x256xf32>
    %cst_25 = arith.constant 1.000000e+00 : f32
    %cst_26 = arith.constant 0.000000e+00 : f32
    %47 = vector.broadcast %cst_25 : f32 to vector<1x256xf32>
    %48 = vector.broadcast %cst_26 : f32 to vector<1x256xf32>
    %49 = arith.select %33, %47, %48 : vector<1x256xi1>, vector<1x256xf32>
    %50 = arith.addf %46, %49 : vector<1x256xf32>
    %c0_27 = arith.constant 0 : index
    %c0_28 = arith.constant 0 : index
    %c0_29 = arith.constant 0 : index
    %51 = vector.load %arg6[%c0_27, %c0_28, %c0_29] : memref<1x1x256xf32, #tpu.memory_space<vmem>>, vector<1x1x256xf32>
    %52 = vector.shape_cast %51 : vector<1x1x256xf32> to vector<1x256xf32>
    %53 = vector.shape_cast %50 : vector<1x256xf32> to vector<1x1x256xf32>
    tpu.vector_store %arg6[%c0_27, %c0_28, %c0_29], %53 {strides = array<i32>} : memref<1x1x256xf32, #tpu.memory_space<vmem>>, vector<1x1x256xf32>,
    return
  }
  func.func @transform_0(%arg0: i32, %arg1: i32, %arg2: i32) -> (i32, i32, i32) {
    %c1_i32 = arith.constant 1 : i32
    %0 = arith.muli %arg0, %c1_i32 : i32
    %1 = arith.addi %0, %arg2 : i32
    %c0_i32 = arith.constant 0 : i32
    %2 = arith.minsi %1, %c0_i32 : i32
    %c0_i32_0 = arith.constant 0 : i32
    %c0_i32_1 = arith.constant 0 : i32
    return %arg1, %c0_i32_0, %2 : i32, i32, i32
  }
  func.func @transform_1(%arg0: i32, %arg1: i32, %arg2: i32) -> (i32, i32, i32) {
    %c1_i32 = arith.constant 1 : i32
    %0 = arith.muli %arg0, %c1_i32 : i32
    %1 = arith.addi %0, %arg2 : i32
    %c0_i32 = arith.constant 0 : i32
    %c0_i32_0 = arith.constant 0 : i32
    return %arg1, %c0_i32, %1 : i32, i32, i32
  }
  func.func @transform_2(%arg0: i32, %arg1: i32, %arg2: i32) -> (i32, i32, i32) {
    %c0_i32 = arith.constant 0 : i32
    %c0_i32_0 = arith.constant 0 : i32
    %c0_i32_1 = arith.constant 0 : i32
    return %arg0, %c0_i32, %c0_i32_0 : i32, i32, i32
  }
  func.func @transform_3(%arg0: i32, %arg1: i32, %arg2: i32) -> (i32, i32, i32) {
    %c0_i32 = arith.constant 0 : i32
    %c0_i32_0 = arith.constant 0 : i32
    %c0_i32_1 = arith.constant 0 : i32
    return %arg0, %c0_i32, %c0_i32_0 : i32, i32, i32
  }
}

</mosaic_0001>

<bundles_post_ra>
// kernel: tpu_custom_call.1
= control target key start
LH: loop header
LB: loop body
LE: loop exit
PB: predicated region body
PF: predicated region fallthrough
CT: control target
= control target key end

     0   :  { %9 = vsyncpa [#allocation4], 0  ;;  %s945_s0 = inlined_call_operand.hbm [shape: f32[2,4,256], index: 0, kind: input, shape index: {}]   ;;  %s946_s1 = inlined_call_operand.vmem [shape: u8[2,1,256], index: 1, kind: input, shape index: {}]   ;;  %s947_s2 = inlined_call_operand.hbm [shape: f32[1,1,256], index: 2, kind: output, shape index: {0}]   ;;  %s948_s3 = inlined_call_operand.hbm [shape: f32[1,1,256], index: 3, kind: output, shape index: {1}]  }
   0x1   :  { %11 = vsyncpa [#allocation4 + $0x1], 0 }
   0x2   :  { %12 = vsyncpa [#allocation5], 0 }
   0x3   :  { %13 = vsyncpa [#allocation8], 0  ;;  %s802_s12 = smov 0   ;;  %s804_s13 = smov 0  }
   0x4   :  { %s806_s14 = smov 0   ;;  %s808_s15 = smov 0  }
   0x5   :  { %s810_s16 = smov 0   ;;  %s812_s17 = smov 0  }
   0x6 LB: > { %s531_s18 = sadd.s32 4294967295, %s775_s17   ;;  %s34_s19 = sadd.s32 1, %s771_s16  ;;  %s775_s17 = sphi %s812_s17, %s19_s17   ;;  %s771_s16 = sphi %s810_s16, %s958_s16   ;;  %s767_s15 = sphi %s808_s15, %s957_s15   ;;  %s763_s14 = sphi %s806_s14, %s956_s14   ;;  %s759_s13 = sphi %s804_s13, %s955_s13   ;;  %s755_s12 = sphi %s802_s12, %s954_s12  }
   0x7   : > { %p36_p0 = scmp.ge.s32.totalorder %s34_s19, 2  ;;  %s53_s20 = sadd.s32 1, %s763_s14 }
   0x8   : > { %p60_p1 = scmp.ne.s32.totalorder %s763_s14, %s759_s13  ;;  %p61_p2 = scmp.eq.s32.totalorder %s775_s17, 0 }
   0x9   : > { %s960_s19 = smov (%p36_p0, %s34_s19), 0  ;;  %p66_p4 = scmp.ne.s32.totalorder %s759_s13, %s755_s12 }
   0xa   : > { %p838_p3 = por %p61_p2, %p60_p1  ;;  %s48_s22 = ssub.s32 %s771_s16, %s960_s19 }
   0xb   : > { %p67_p5 = scmp.eq.s32.totalorder %s531_s18, 0  ;;  %p51_p6 = scmp.eq.s32.totalorder %s48_s22, 0 }
   0xc   : > { %p563_p8 = scmp.lt.s32.totalorder %s775_s17, 2  ;;  %s172_s25 = sand.u32 1, %s763_s14  }
   0xd   : > { %p847_p7 = por %p67_p5, %p66_p4  ;;  %s547_s26 = sshll.u32 %s771_s16, 3 }
   0xe   : > { %s853_s24 = scalar_select %p51_p6, %s763_s14, %s53_s20  }
   0xf   : > { %s534_s27 = sshll.u32 %s172_s25, 3  ;;  %s186_s30 = scalar_lea.hbm %s945_s0, %s547_s26 }
  0x10   : > { %s188_s4 = sshll.u32 %s186_s30, 4  ;;  %s176_s5 = scalar_lea.vmem [#allocation3], %s534_s27  ;;  %s189_s4 = int_to_ptr.hbm [resolvable:$true] %s188_s4 }
  0x11   : > { %s190_s6 = sshll.u32 %s176_s5, 4  ;;  %p560_p9 = pnand %p563_p8, %p838_p3  ;;  %s191_s6 = int_to_ptr.vmem [resolvable:$true] %s190_s6 }
  0x12   : > { %p537_p10 = scmp.ge.s32.totalorder %s775_s17, 1  ;;  %p209_p11 = scmp.lt.s32.totalorder %s775_s17, 3 }
  0x13   : > { %s173_s7 = scalar_lea.sflag [#allocation4], %s172_s25 }
  0x14   : > { %562 = dma.hbm_to_vmem [thread:$0]  (!%p560_p9), %s189_s4, 128, %s191_s6, %s173_s7  }
  0x15   : > { %p210_p12 = pnand %p537_p10, %p209_p11 }
  0x16   : > { %s215_s8 = sand.u32 (!%p210_p12), 1, %s759_s13  }
  0x17   : > { %213 = sbr.rel (%p210_p12) target bundleno = 141 (0x8d), region = 28  ;;  %s538_s9 = sshll.u32 (!%p210_p12), %s215_s8, 3 }
  0x18   : > { %s216_s10 = scalar_lea.sflag (!%p210_p12), [#allocation4], %s215_s8  ;;  %s219_s11 = scalar_lea.vmem (!%p210_p12), [#allocation3], %s538_s9 }
  0x1c   : > { %742 = dma.done.wait (%p847_p7), %s216_s10, 128  }
  0x1d   : > { %744 = vsyncadd (%p847_p7), %s216_s10, 4294967168  ;;  %p253_p13 = scmp.lt.s32.totalorder %s767_s15, 1  ;;  %p262_p0 = scmp.eq.s32.totalorder %s767_s15, 0 }
  0x1e   : > { %v268_v0 = vlaneseq (%p262_p0)  ;;  %v777_v1 = vmov (%p262_p0), 839922192   ;;  %v778_v4 = vmov (%p262_p0), 0.0  }
  0x1f   : > { %s962_s15 = smov (!%p253_p13, %s767_s15), 1  ;;  %267 = sbr.rel (!%p262_p0) target bundleno = 38 (0x26), region = 36  ;;  %v277_v2 = vunpack.c.l.s4 (%p262_p0), %v777_v1 }
  0x20   : > { %s539_s12 = sshll.u32 %s962_s15, 1  ;;  %vm270_vm0 = vcmp.lt.s32.totalorder (%p262_p0), %v268_v0, 256  ;;  %v275_v3 = vshrl.u32 (%p262_p0), %v268_v0, 7 }
  0x21   : > { %s259_s22 = scalar_lea.vmem %s946_s1, %s539_s12  ;;  %272 = vst.msk [vmem:[#allocation6] sm:$0x3] (%p262_p0), %vm270_vm0, %v778_v4  ;;  %v278_v5 = vunpack.c.0.s8 (%p262_p0), %v277_v2 }
  0x22   : > { %273 = vst.msk [vmem:[#allocation7] sm:$0x3] (%p262_p0), %vm270_vm0, %v778_v4 }
  0x23   : > { %v279_v6 = vperm.slane (%p262_p0), %v275_v3, %v278_v5 }
  0x25   : > { %280 = vst [vmem:[#allocation2] sm:$0xff] %v279_v6 }
  0x26 PF: > { %v281_v7 = vld [vmem:[%s219_s11] sm:$0xff]  ;;  %vm291_vm1 = vcmask 1043456   ;;  %v282_v16 = vld [vmem:[%s259_s22] sm:$0x3]  ;;  %v779_v4 = vmov 0.0   ;;  %vm393_vm4 = vcmask 1040384  }
  0x27   : > { %286 = vst [vmem:[#allocation1] ss:$2 sm:$0xff] %v281_v7  ;;  %v283_v19 = vunpack.c.0.s8 %v282_v16  ;;  %s780_s15 = smov [#allocation7]   ;;  %s434_s27 = sshll.u32 %s948_s3, 4  ;;  %s435_s27 = int_to_ptr.hbm [resolvable:$true] %s434_s27 }
  0x28   : > { %s432_s23 = sshll.u32 %s780_s15, 4  ;;  %p896_p1 = scmp.eq.s32.totalorder %s531_s18, 1  ;;  %s433_s23 = int_to_ptr.vmem [resolvable:$true] %s432_s23 }
  0x29   : > { %v877_v24 = vand.u32 255, %v283_v19  ;;  %s781_s18 = smov [#allocation6]   ;;  %s420_s5 = sshll.u32 %s947_s2, 4  ;;  %s421_s5 = int_to_ptr.hbm [resolvable:$true] %s420_s5 }
  0x2a   : > { %s418_s29 = sshll.u32 %s781_s18, 4  ;;  %s419_s29 = int_to_ptr.vmem [resolvable:$true] %s418_s29 }
  0x2b   : > { %v340_v29 = vperm.slane %v877_v24, 4  ;;  %v339_v32 = vperm.slane %v877_v24, 0  ;;  %vm379_vm3 = vcmp.ne.s32.totalorder %v877_v24, 255 }
  0x2c   : > { %v338_v37 = vld [vmem:[#allocation2] sm:$0xff]  ;;  %v403_v5 = vsel %vm379_vm3, 1.0, %v779_v4 }
  0x2d   : > { %v342_v33 = vperm.slane %v340_v29, 0  ;;  %v341_v34 = vperm.slane %v339_v32, 0  ;;  %v405_v6 = vrot.slane %v403_v5, 3 }
  0x2e   : > { %v287_v8 = vld.sshfl [vmem:[#allocation1] sm:$0xff pattern:$0x75316420]  ;;  %v288_v9 = vld.sshfl [vmem:[#allocation1 + $0x8] sm:$0xff pattern:$0x75316420] }
  0x2f   : > { %v292_v10 = vsel %vm291_vm1, %v287_v8, -inf  ;;  %v299_v11 = vsel %vm291_vm1, %v288_v9, -inf  ;;  %v343_v35 = vrot.slane %v342_v33, 4  ;;  %v397_v9 = vlaneseq }
  0x30   : > { %v293_v12 = vrot.slane %v292_v10, 4  ;;  %v300_v13 = vrot.slane %v299_v11, 4 }
  0x31   : > { %v344_v38 = vsel %vm291_vm1, %v341_v34, %v343_v35  ;;  %vm900_vm5 = vcmp.lt.s32.totalorder %v397_v9, 256 }
  0x32   : > { %v294_v14 = vmax.f32 %v292_v10, %v293_v12  ;;  %v301_v15 = vmax.f32 %v299_v11, %v300_v13  ;;  %vm345_vm2 = vcmp.eq.s32.totalorder %v338_v37, %v344_v38  ;;  %v402_v10 = vld [vmem:[#allocation7] sm:$0x3]  ;;  %v406_v11 = vsel %vm393_vm4, %v403_v5, %v405_v6 }
  0x34   : > { %v295_v17 = vrot.slane %v294_v14, 2  ;;  %v302_v18 = vrot.slane %v301_v15, 2 }
  0x36   : > { %v296_v20 = vmax.f32 %v294_v14, %v295_v17  ;;  %v303_v21 = vmax.f32 %v301_v15, %v302_v18  ;;  %v408_v15 = vadd.f32 %v406_v11, %v402_v10 }
  0x38   : > { %v297_v22 = vrot.slane %v296_v20, 1  ;;  %v304_v23 = vrot.slane %v303_v21, 1  ;;  %409 = vst.msk [vmem:[#allocation7] sm:$0x3] %vm900_vm5, %v408_v15 }
  0x39   : > { %554 = dma.vmem_to_hbm [thread:$0]  (%p896_p1), %s433_s23, 32, %s435_s27, [#allocation8]  }
  0x3a   : > { %v305_v25 = vmax.f32 %v303_v21, %v304_v23  ;;  %v298_v26 = vmax.f32 %v296_v20, %v297_v22 }
  0x3c   : > { %v308_v27 = vrot.slane %v305_v25, 4 }
  0x3e   : > { %v309_v28 = vsel %vm291_vm1, %v298_v26, %v308_v27 }
  0x3f   : > { %v311_v30 = vsub.f32 %v281_v7, %v309_v28 }
  0x41   : > { %v312_v31 = vmul.f32 1.442695, %v311_v30  ;;  %v346_v39 = vsel %vm345_vm2, %v311_v30, 0.0 }
  0x43   : > { %621 = vpow2.f32 %v312_v31 }
  0x49   : > { %v622_v36 = vpop.eup %621 }
  0x4a   : > { %315 = vst [vmem:[#allocation1] ss:$2 sm:$0xff] %v622_v36 }
  0x51   : > { %v316_v40 = vld.sshfl [vmem:[#allocation1] sm:$0xff pattern:$0x75316420]  ;;  %v317_v41 = vld.sshfl [vmem:[#allocation1 + $0x8] sm:$0xff pattern:$0x75316420] }
  0x52   : > { %v320_v42 = vsel %vm291_vm1, %v316_v40, 0.0  ;;  %v327_v43 = vsel %vm291_vm1, %v317_v41, 0.0  ;;  %348 = vst [vmem:[#allocation1] ss:$2 sm:$0xff] %v346_v39  ;;  %v380_v40 = vld [vmem:[#allocation6] sm:$0x3] }
  0x53   : > { %v321_v44 = vrot.slane %v320_v42, 4  ;;  %v328_v45 = vrot.slane %v327_v43, 4 }
  0x55   : > { %v322_v46 = vadd.f32 %v321_v44, %v320_v42  ;;  %v329_v47 = vadd.f32 %v328_v45, %v327_v43 }
  0x57   : > { %v323_v48 = vrot.slane %v322_v46, 2  ;;  %v330_v49 = vrot.slane %v329_v47, 2 }
  0x59   : > { %v324_v50 = vadd.f32 %v323_v48, %v322_v46  ;;  %v331_v51 = vadd.f32 %v330_v49, %v329_v47  ;;  %v349_v52 = vld.sshfl [vmem:[#allocation1] sm:$0xff pattern:$0x75316420]  ;;  %v350_v53 = vld.sshfl [vmem:[#allocation1 + $0x8] sm:$0xff pattern:$0x75316420] }
  0x5a   : > { %v353_v54 = vsel %vm291_vm1, %v349_v52, 0.0  ;;  %v360_v55 = vsel %vm291_vm1, %v350_v53, 0.0 }
  0x5b   : > { %v325_v56 = vrot.slane %v324_v50, 1  ;;  %v332_v57 = vrot.slane %v331_v51, 1  ;;  %v354_v58 = vrot.slane %v353_v54, 4  ;;  %v361_v59 = vrot.slane %v360_v55, 4 }
  0x5d   : > { %v326_v60 = vadd.f32 %v325_v56, %v324_v50  ;;  %v333_v61 = vadd.f32 %v332_v57, %v331_v51  ;;  %v355_v62 = vadd.f32 %v354_v58, %v353_v54  ;;  %v362_v63 = vadd.f32 %v361_v59, %v360_v55 }
  0x5f   : > { %623 = vlog2.f32 %v326_v60  ;;  %v356_v0 = vrot.slane %v355_v62, 2  ;;  %v363_v1 = vrot.slane %v362_v63, 2 }
  0x60   : > { %625 = vlog2.f32 %v333_v61 }
  0x61   : > { %v357_v2 = vadd.f32 %v356_v0, %v355_v62  ;;  %v364_v3 = vadd.f32 %v363_v1, %v362_v63 }
  0x63   : > { %v358_v7 = vrot.slane %v357_v2, 1  ;;  %v365_v8 = vrot.slane %v364_v3, 1 }
  0x65   : > { %v624_v12 = vpop.eup %623  ;;  %v359_v13 = vadd.f32 %v358_v7, %v357_v2  ;;  %v366_v14 = vadd.f32 %v365_v8, %v364_v3 }
  0x66   : > { %v626_v16 = vpop.eup %625  ;;  %v335_v17 = vmul.f32 0.6931472, %v624_v12 }
  0x67   : > { %v337_v19 = vmul.f32 0.6931472, %v626_v16 }
  0x68   : > { %v367_v20 = vsub.f32 %v359_v13, %v335_v17 }
  0x69   : > { %v368_v21 = vsub.f32 %v366_v14, %v337_v19 }
  0x6a   : > { %v369_v22 = vmul.f32 1.442695, %v367_v20 }
  0x6b   : > { %v371_v23 = vmul.f32 1.442695, %v368_v21 }
  0x6c   : > { %627 = vpow2.f32 %v369_v22 }
  0x6d   : > { %629 = vpow2.f32 %v371_v23 }
  0x72   : > { %v628_v25 = vpop.eup %627 }
  0x73   : > { %v630_v26 = vpop.eup %629  ;;  %v373_v27 = vsub.f32 1.0, %v628_v25 }
  0x74   : > { %v374_v28 = vsub.f32 1.0, %v630_v26 }
  0x75   : > { %v375_v29 = vmax.f32 %v373_v27, 0.0 }
  0x76   : > { %v376_v30 = vmax.f32 %v374_v28, 0.0 }
  0x77   : > { %v377_v31 = vmul.f32 %v375_v29, %v375_v29 }
  0x78   : > { %v378_v32 = vmul.f32 %v376_v30, %v376_v30 }
  0x79   : > { %v381_v33 = vsub.f32 0.0, %v377_v31 }
  0x7a   : > { %v382_v34 = vsub.f32 0.0, %v378_v32 }
  0x7b   : > { %v383_v36 = vmul.f32 %v381_v33, %v367_v20 }
  0x7c   : > { %v384_v35 = vmul.f32 %v382_v34, %v368_v21 }
  0x7e   : > { %v387_v37 = vrot.slane %v384_v35, 4 }
  0x80   : > { %v388_v38 = vsel %vm291_vm1, %v383_v36, %v387_v37 }
  0x81   : > { %v390_v39 = vsel %vm379_vm3, %v388_v38, 0.0 }
  0x82   : > { %v392_v41 = vrot.slane %v390_v39, 3 }
  0x84   : > { %v394_v42 = vsel %vm393_vm4, %v390_v39, %v392_v41 }
  0x85   : > { %v396_v43 = vadd.f32 %v394_v42, %v380_v40 }
  0x87   : > { %401 = vst.msk [vmem:[#allocation6] sm:$0x3] %vm900_vm5, %v396_v43 }
  0x88   : > { %552 = dma.vmem_to_hbm [thread:$0]  (%p896_p1), %s419_s29, 32, %s421_s5, [#allocation5]  }
  0x89   : > { %746 = dma.done.wait (%p896_p1), [#allocation5], 32  }
  0x8a   : > { %748 = vsyncadd (%p896_p1), [#allocation5], 4294967264 }
  0x8b   : > { %750 = dma.done.wait (%p896_p1), [#allocation8], 32  }
  0x8c   : > { %752 = vsyncadd (%p896_p1), [#allocation8], 4294967264 }
  0x8d PF: > { %s19_s17 = sadd.s32 1, %s775_s17   ;;  %s954_s12 = smov %s759_s13 }
  0x8e   : > { %p16_p2 = scmp.ge.s32.totalorder %s19_s17, 4   ;;  %s955_s13 = smov %s763_s14 }
  0x8f   : > { %s956_s14 = smov %s853_s24  ;;  %s957_s15 = smov %s771_s16 }
  0x90   : > { %s958_s16 = smov %s960_s19  ;;  %18 = sbr.rel (!%p16_p2) target bundleno = 6 (0x6), region = 82 }
  0x95   :  { %453 = vsyncpa [#allocation4], 1 }
  0x96   :  { %455 = vsyncpa [#allocation4 + $0x1], 1 }
  0x97   :  { %456 = vsyncpa [#allocation5], 1 }
  0x98   :  { %458 = vsyncpa [#allocation5 + $0x1], 1 }
  0x99   :  { %459 = vsyncpa [#allocation8], 1 }

</bundles_post_ra>
